<compile_context>
chip_gen: v7x
topology: tpu7x:2x2x1
jax: 0.10.0
libtpu: 0.0.40
codegen_flags: <defaults>
</compile_context>

<pallas_src>
import functools

import jax
import jax.numpy as jnp
from jax.experimental import pallas as pl
from jax.experimental.pallas import tpu as pltpu


# ----------------------------- Pallas kernels -------------------------------
# grid = (M_tiles, K_tiles); K is the reduction axis (output block index is
# constant across it); f32 accumulator lives in VMEM scratch.

def _matmul_bias_kernel(a_ref, w_ref, b_ref, o_ref, acc_ref):
    k = pl.program_id(1)

    @pl.when(k == 0)
    def _():
        acc_ref[...] = jnp.zeros_like(acc_ref)

    acc_ref[...] += jnp.dot(a_ref[...], w_ref[...],
                            preferred_element_type=jnp.float32)

    @pl.when(k == pl.num_programs(1) - 1)
    def _():
        o_ref[...] = (acc_ref[...] + b_ref[...]).astype(o_ref.dtype)


def _matmul_bias_relu_kernel(a_ref, w_ref, b_ref, o_ref, acc_ref):
    k = pl.program_id(1)

    @pl.when(k == 0)
    def _():
        acc_ref[...] = jnp.zeros_like(acc_ref)

    acc_ref[...] += jnp.dot(a_ref[...], w_ref[...],
                            preferred_element_type=jnp.float32)

    @pl.when(k == pl.num_programs(1) - 1)
    def _():
        o_ref[...] = jnp.maximum(acc_ref[...] + b_ref[...],
                                 0.0).astype(o_ref.dtype)


def _matmul_bias_add_relu_kernel(a_ref, w_ref, b_ref, r_ref, o_ref, acc_ref):
    # Residual add lives in the last-k epilogue so the first MXU issue per
    # M tile does not wait on the residual tile's DMA.
    k = pl.program_id(1)

    @pl.when(k == 0)
    def _():
        acc_ref[...] = jnp.zeros_like(acc_ref)

    acc_ref[...] += jnp.dot(a_ref[...], w_ref[...],
                            preferred_element_type=jnp.float32)

    @pl.when(k == pl.num_programs(1) - 1)
    def _():
        o_ref[...] = jnp.maximum(acc_ref[...] + r_ref[...] + b_ref[...],
                                 0.0).astype(o_ref.dtype)


# ------------------------------ call wrapper ---------------------------------

_LANE = 128      # lane width / MXU alignment
_TM_CAP = 512    # M tile cap (amortizes per-grid-step overhead, re-streams
                 # the folded weight matrix fewer times)
_TK_CAP = 512    # K tile cap
# Working set at the caps (bf16 A/W, f32 out/res/acc, double-buffered) is
# well under 48 MiB, which fits v7x's 64 MiB per-TensorCore VMEM as well as
# v5e / v6e's 128 MiB.
_COMPILER_PARAMS = pltpu.CompilerParams(
    dimension_semantics=("parallel", "arbitrary"),
    vmem_limit_bytes=48 * 1024 * 1024,
)


def _round_up(x, m):
    return (x + m - 1) // m * m


def _pad2(x, rows, cols):
    r, c = x.shape
    if r == rows and c == cols:
        return x
    return jnp.pad(x, ((0, rows - r), (0, cols - c)))


def _pick_tk(Kp):
    """Largest multiple of 128 <= _TK_CAP that divides Kp (Kp % 128 == 0)."""
    if Kp <= _TK_CAP:
        return Kp
    cand = _TK_CAP
    while cand >= _LANE:
        if Kp % cand == 0:
            return cand
        cand -= _LANE
    return _LANE


def _tiles(M, K, C):
    tm = min(_TM_CAP, _round_up(M, 8))
    # Keep >= 2 M tiles so the "parallel" axis can shard across v7x's 2 TCs.
    if M > 8 and _round_up(M, tm) // tm < 2:
        tm = _round_up(pl.cdiv(M, 2), 8)
    Mp = _round_up(M, tm)
    Kp = _round_up(K, _LANE)          # pad K to 128 only (no tk over-padding)
    tk = _pick_tk(Kp)
    Cp = _round_up(C, _LANE)
    return tm, tk, Mp, Kp, Cp


def matmul_bn_fused(a, w, bias, residual=None, relu=False,
                    out_dtype=jnp.float32):
    """(M,K) @ (K,C) + bias [+ residual] [+ ReLU] with bf16 MXU operands."""
    M, K = a.shape
    _, C = w.shape
    tm, tk, Mp, Kp, Cp = _tiles(M, K, C)

    a_p = _pad2(a.astype(jnp.bfloat16), Mp, Kp)
    w_p = _pad2(w.astype(jnp.bfloat16), Kp, Cp)
    b_p = _pad2(bias.astype(jnp.float32), 1, Cp)

    in_specs = [
        pl.BlockSpec((tm, tk), lambda i, k: (i, k)),
        pl.BlockSpec((tk, Cp), lambda i, k: (k, 0)),
        pl.BlockSpec((1, Cp), lambda i, k: (0, 0)),
    ]
    args = [a_p, w_p, b_p]

    if residual is not None:
        kernel = _matmul_bias_add_relu_kernel
        in_specs.append(pl.BlockSpec((tm, Cp), lambda i, k: (i, 0)))
        args.append(_pad2(residual.astype(jnp.float32), Mp, Cp))
    elif relu:
        kernel = _matmul_bias_relu_kernel
    else:
        kernel = _matmul_bias_kernel

    out = pl.pallas_call(
        kernel,
        out_shape=jax.ShapeDtypeStruct((Mp, Cp), out_dtype),
        grid_spec=pltpu.PrefetchScalarGridSpec(
            num_scalar_prefetch=0,
            grid=(Mp // tm, Kp // tk),
            in_specs=in_specs,
            out_specs=pl.BlockSpec((tm, Cp), lambda i, k: (i, 0)),
            scratch_shapes=[pltpu.VMEM((tm, Cp), jnp.float32)],
        ),
        compiler_params=_COMPILER_PARAMS,
    )(*args)
    return out[:M, :C]


# ------------------------------ plain-JAX glue -------------------------------

def im2col_3x3(x_nhwc, stride):
    """3x3, pad=1 patch extraction -> (N*Ho*Wo, 9*C) in (kh, kw, c) order."""
    xp = jnp.pad(x_nhwc, ((0, 0), (1, 1), (1, 1), (0, 0)))
    N, Hp, Wp, C = xp.shape
    Ho = (Hp - 3) // stride + 1
    Wo = (Wp - 3) // stride + 1
    cols = []
    for dh in range(3):
        for dw in range(3):
            cols.append(xp[:, dh:dh + stride * (Ho - 1) + 1:stride,
                              dw:dw + stride * (Wo - 1) + 1:stride, :])
    patches = jnp.concatenate(cols, axis=-1)            # (N, Ho, Wo, 9*C)
    return patches.reshape(N * Ho * Wo, 9 * C), (N, Ho, Wo)


def fold_bn_into_weights(w_kc, gamma, beta, mean, var, eps=1e-5):
    """Fold inference-mode BN into (K, C) weights + per-channel bias."""
    scale = gamma / jnp.sqrt(var + eps)
    bias = beta - mean * scale
    w_folded = (w_kc * scale[None, :]).astype(jnp.float32)
    return w_folded, bias.reshape(1, -1).astype(jnp.float32)


def init_basic_block_params(key, in_chan, out_chan, stride):
    ks = jax.random.split(key, 16)

    def conv_w(k, shape):  # PyTorch OIHW layout
        fan_in = shape[1] * shape[2] * shape[3]
        return jax.random.normal(k, shape, jnp.float32) / jnp.sqrt(float(fan_in))

    def bn_p(k):
        k1, k2, k3, k4 = jax.random.split(k, 4)
        gamma = jax.random.uniform(k1, (out_chan,), jnp.float32, 0.5, 1.5)
        beta = 0.1 * jax.random.normal(k2, (out_chan,), jnp.float32)
        mean = 0.1 * jax.random.normal(k3, (out_chan,), jnp.float32)
        var = jax.random.uniform(k4, (out_chan,), jnp.float32, 0.5, 1.5)
        return (gamma, beta, mean, var)

    params = {
        "w1": conv_w(ks[0], (out_chan, in_chan, 3, 3)),
        "bn1": bn_p(ks[1]),
        "w2": conv_w(ks[2], (out_chan, out_chan, 3, 3)),
        "bn2": bn_p(ks[3]),
    }
    if in_chan != out_chan or stride != 1:
        params["wd"] = conv_w(ks[4], (out_chan, in_chan, 1, 1))
        params["bnd"] = bn_p(ks[5])
    return params


@functools.partial(jax.jit, static_argnums=2)
def basic_block_forward(params, x_nchw, stride):
    x = jnp.transpose(x_nchw, (0, 2, 3, 1)).astype(jnp.float32)   # NCHW->NHWC
    N, H, W, Cin = x.shape
    Cout = params["w1"].shape[0]

    # conv1 (3x3, stride, pad=1) + bn1   (no ReLU, matching the module).
    # Patches are built from a bf16 copy of x (halves the 9x-inflated HBM
    # traffic); out1 is stored bf16 for the same reason on the conv2 side.
    p1, (_, Ho, Wo) = im2col_3x3(x.astype(jnp.bfloat16), stride)
    w1 = jnp.transpose(params["w1"], (2, 3, 1, 0)).reshape(9 * Cin, Cout)
    w1f, b1 = fold_bn_into_weights(w1, *params["bn1"])
    out1 = matmul_bn_fused(p1, w1f, b1, out_dtype=jnp.bfloat16)
    out1 = out1.reshape(N, Ho, Wo, Cout)

    # conv2 (3x3, stride=1, pad=1) + bn2 + residual + ReLU (fused kernel).
    p2, _ = im2col_3x3(out1, 1)                                    # bf16
    w2 = jnp.transpose(params["w2"], (2, 3, 1, 0)).reshape(9 * Cout, Cout)
    w2f, b2 = fold_bn_into_weights(w2, *params["bn2"])

    if "wd" in params:
        # 1x1 downsample conv + BN fused into the SAME K reduction:
        # A = [patches | x_ds], W = [w2f ; wdf], bias = b2 + bd.
        x_ds = x[:, ::stride, ::stride, :][:, :Ho, :Wo, :].reshape(
            N * Ho * Wo, Cin)
        wd = jnp.transpose(params["wd"], (2, 3, 1, 0)).reshape(Cin, Cout)
        wdf, bd = fold_bn_into_weights(wd, *params["bnd"])
        a_full = jnp.concatenate([p2, x_ds.astype(jnp.bfloat16)], axis=1)
        w_full = jnp.concatenate([w2f, wdf], axis=0)
        out = matmul_bn_fused(a_full, w_full, b2 + bd, relu=True)
    else:
        residual = x.reshape(N * Ho * Wo, Cout)
        out = matmul_bn_fused(p2, w2f, b2, residual=residual, relu=True)

    out = out.reshape(N, Ho, Wo, Cout)
    return jnp.transpose(out, (0, 3, 1, 2))                        # NHWC->NCHW


# ------------------------------- reference -----------------------------------

def ref_forward(params, x, stride):
    def conv(x, w, s, pad):
        return jax.lax.conv_general_dilated(
            x, w, (s, s), [(pad, pad), (pad, pad)],
            dimension_numbers=("NCHW", "OIHW", "NCHW"))

    def bn(x, p):
        gamma, beta, mean, var = p
        sc = gamma / jnp.sqrt(var + 1e-5)
        bi = beta - mean * sc
        return x * sc[None, :, None, None] + bi[None, :, None, None]

    out = bn(conv(x, params["w1"], stride, 1), params["bn1"])
    out = bn(conv(out, params["w2"], 1, 1), params["bn2"])
    res = bn(conv(x, params["wd"], stride, 0), params["bnd"]) \
        if "wd" in params else x
    return jnp.maximum(out + res, 0.0)


# --------------------------------- main ---------------------------------------

if __name__ == "__main__":
    key = jax.random.PRNGKey(0)

    configs = [
        # (N, in_chan, out_chan, H, W, stride)
        (2, 4, 8, 16, 16, 1),    # channel-expand -> fused 1x1 downsample path
        (2, 8, 8, 16, 16, 1),    # identity residual path
        (2, 4, 8, 16, 16, 2),    # strided downsample path
    ]

    for idx, (N, cin, cout, H, W, stride) in enumerate(configs):
        k_x, k_p = jax.random.split(jax.random.fold_in(key, idx))
        x = jax.random.normal(k_x, (N, cin, H, W), jnp.float32)
        params = init_basic_block_params(k_p, cin, cout, stride)

        out = jax.block_until_ready(basic_block_forward(params, x, stride))
        ref = jax.block_until_ready(ref_forward(params, x, stride))

        assert out.shape == ref.shape, (out.shape, ref.shape)
        max_err = float(jnp.max(jnp.abs(out - ref)))
        # bf16 MXU operands (f32 accumulation) -> relaxed tolerance vs the
        # full-f32 reference.
        assert jnp.allclose(out, ref, atol=5e-2, rtol=5e-2), max_err

    print("KERNEL_OK")
</pallas_src>

<mosaic_0001>
module attributes {stable_mosaic.version = 11 : i64} {
  func.func @_matmul_bias_kernel(%arg0: i32, %arg1: i32, %arg2: memref<256x128xbf16, #tpu.memory_space<vmem>>, %arg3: memref<128x128xbf16, #tpu.memory_space<vmem>>, %arg4: memref<1x128xf32, #tpu.memory_space<vmem>>, %arg5: memref<256x128xbf16, #tpu.memory_space<vmem>>, %arg6: memref<256x128xf32, #tpu.memory_space<vmem>>) attributes {dimension_semantics = [#tpu.dimension_semantics<parallel>, #tpu.dimension_semantics<arbitrary>], iteration_bounds = array<i64: 2, 1>, scalar_prefetch = 0 : i64, scratch_operands = 1 : i64, tpu.core_type = #tpu.core_type<tc>, window_params = [{transform_indices = @transform_0, window_bounds = array<i64: 256, 128>}, {transform_indices = @transform_1, window_bounds = array<i64: 128, 128>}, {pipeline_mode = #tpu.pipeline_mode<synchronous>, transform_indices = @transform_2, window_bounds = array<i64: 1, 128>}, {transform_indices = @transform_3, window_bounds = array<i64: 256, 128>}]} {
    %c0_i32 = arith.constant 0 : i32
    %0 = arith.cmpi eq, %arg1, %c0_i32 : i32
    %1 = arith.extui %0 : i1 to i32
    %c0_i32_0 = arith.constant 0 : i32
    %2 = arith.cmpi ne, %1, %c0_i32_0 : i32
    scf.if %2 {
      %cst_10 = arith.constant 0.000000e+00 : f32
      %12 = vector.broadcast %cst_10 : f32 to vector<256x128xf32>
      %c0_11 = arith.constant 0 : index
      %c0_12 = arith.constant 0 : index
      %13 = vector.load %arg6[%c0_11, %c0_12] : memref<256x128xf32, #tpu.memory_space<vmem>>, vector<256x128xf32>
      tpu.vector_store %arg6[%c0_11, %c0_12], %12 {strides = array<i32>} : memref<256x128xf32, #tpu.memory_space<vmem>>, vector<256x128xf32>,
    } else {
    }
    %c0 = arith.constant 0 : index
    %c0_1 = arith.constant 0 : index
    %3 = vector.load %arg6[%c0, %c0_1] : memref<256x128xf32, #tpu.memory_space<vmem>>, vector<256x128xf32>
    %c0_2 = arith.constant 0 : index
    %c0_3 = arith.constant 0 : index
    %4 = vector.load %arg2[%c0_2, %c0_3] : memref<256x128xbf16, #tpu.memory_space<vmem>>, vector<256x128xbf16>
    %c0_4 = arith.constant 0 : index
    %c0_5 = arith.constant 0 : index
    %5 = vector.load %arg3[%c0_4, %c0_5] : memref<128x128xbf16, #tpu.memory_space<vmem>>, vector<128x128xbf16>
    %cst = arith.constant dense<0.000000e+00> : vector<256x128xf32>
    %6 = tpu.matmul %4, %5, %cst {dimension_numbers = #tpu.dot_dimension_numbers<[1], [0], [0], [1], [0, 0, 1, 1], [], []>} : vector<256x128xbf16>, vector<128x128xbf16>, vector<256x128xf32> -> vector<256x128xf32>
    %7 = arith.addf %3, %6 : vector<256x128xf32>
    %c0_6 = arith.constant 0 : index
    %c0_7 = arith.constant 0 : index
    %8 = vector.load %arg6[%c0_6, %c0_7] : memref<256x128xf32, #tpu.memory_space<vmem>>, vector<256x128xf32>
    tpu.vector_store %arg6[%c0_6, %c0_7], %7 {strides = array<i32>} : memref<256x128xf32, #tpu.memory_space<vmem>>, vector<256x128xf32>,
    %c0_i32_8 = arith.constant 0 : i32
    %9 = arith.cmpi eq, %arg1, %c0_i32_8 : i32
    %10 = arith.extui %9 : i1 to i32
    %c0_i32_9 = arith.constant 0 : i32
    %11 = arith.cmpi ne, %10, %c0_i32_9 : i32
    scf.if %11 {
      %c0_10 = arith.constant 0 : index
      %c0_11 = arith.constant 0 : index
      %12 = vector.load %arg6[%c0_10, %c0_11] : memref<256x128xf32, #tpu.memory_space<vmem>>, vector<256x128xf32>
      %c0_12 = arith.constant 0 : index
      %c0_13 = arith.constant 0 : index
      %13 = vector.load %arg4[%c0_12, %c0_13] : memref<1x128xf32, #tpu.memory_space<vmem>>, vector<1x128xf32>
      %14 = vector.broadcast %13 : vector<1x128xf32> to vector<256x128xf32>
      %15 = arith.addf %12, %14 : vector<256x128xf32>
      %16 = arith.truncf %15 : vector<256x128xf32> to vector<256x128xbf16>
      %c0_14 = arith.constant 0 : index
      %c0_15 = arith.constant 0 : index
      %17 = vector.load %arg5[%c0_14, %c0_15] : memref<256x128xbf16, #tpu.memory_space<vmem>>, vector<256x128xbf16>
      tpu.vector_store %arg5[%c0_14, %c0_15], %16 {strides = array<i32>} : memref<256x128xbf16, #tpu.memory_space<vmem>>, vector<256x128xbf16>,
    } else {
    }
    return
  }
  func.func @transform_0(%arg0: i32, %arg1: i32) -> (i32, i32) {
    %c0_i32 = arith.constant 0 : i32
    return %arg0, %arg1 : i32, i32
  }
  func.func @transform_1(%arg0: i32, %arg1: i32) -> (i32, i32) {
    %c0_i32 = arith.constant 0 : i32
    %c0_i32_0 = arith.constant 0 : i32
    return %arg1, %c0_i32 : i32, i32
  }
  func.func @transform_2(%arg0: i32, %arg1: i32) -> (i32, i32) {
    %c0_i32 = arith.constant 0 : i32
    %c0_i32_0 = arith.constant 0 : i32
    %c0_i32_1 = arith.constant 0 : i32
    return %c0_i32, %c0_i32_0 : i32, i32
  }
  func.func @transform_3(%arg0: i32, %arg1: i32) -> (i32, i32) {
    %c0_i32 = arith.constant 0 : i32
    %c0_i32_0 = arith.constant 0 : i32
    return %arg0, %c0_i32 : i32, i32
  }
}

module attributes {stable_mosaic.version = 11 : i64} {
  func.func @_matmul_bias_relu_kernel(%arg0: i32, %arg1: i32, %arg2: memref<256x128xbf16, #tpu.memory_space<vmem>>, %arg3: memref<128x128xbf16, #tpu.memory_space<vmem>>, %arg4: memref<1x128xf32, #tpu.memory_space<vmem>>, %arg5: memref<256x128xf32, #tpu.memory_space<vmem>>, %arg6: memref<256x128xf32, #tpu.memory_space<vmem>>) attributes {dimension_semantics = [#tpu.dimension_semantics<parallel>, #tpu.dimension_semantics<arbitrary>], iteration_bounds = array<i64: 2, 1>, scalar_prefetch = 0 : i64, scratch_operands = 1 : i64, tpu.core_type = #tpu.core_type<tc>, window_params = [{transform_indices = @transform_0, window_bounds = array<i64: 256, 128>}, {transform_indices = @transform_1, window_bounds = array<i64: 128, 128>}, {pipeline_mode = #tpu.pipeline_mode<synchronous>, transform_indices = @transform_2, window_bounds = array<i64: 1, 128>}, {transform_indices = @transform_3, window_bounds = array<i64: 256, 128>}]} {
    %c0_i32 = arith.constant 0 : i32
    %0 = arith.cmpi eq, %arg1, %c0_i32 : i32
    %1 = arith.extui %0 : i1 to i32
    %c0_i32_0 = arith.constant 0 : i32
    %2 = arith.cmpi ne, %1, %c0_i32_0 : i32
    scf.if %2 {
      %cst_10 = arith.constant 0.000000e+00 : f32
      %12 = vector.broadcast %cst_10 : f32 to vector<256x128xf32>
      %c0_11 = arith.constant 0 : index
      %c0_12 = arith.constant 0 : index
      %13 = vector.load %arg6[%c0_11, %c0_12] : memref<256x128xf32, #tpu.memory_space<vmem>>, vector<256x128xf32>
      tpu.vector_store %arg6[%c0_11, %c0_12], %12 {strides = array<i32>} : memref<256x128xf32, #tpu.memory_space<vmem>>, vector<256x128xf32>,
    } else {
    }
    %c0 = arith.constant 0 : index
    %c0_1 = arith.constant 0 : index
    %3 = vector.load %arg6[%c0, %c0_1] : memref<256x128xf32, #tpu.memory_space<vmem>>, vector<256x128xf32>
    %c0_2 = arith.constant 0 : index
    %c0_3 = arith.constant 0 : index
    %4 = vector.load %arg2[%c0_2, %c0_3] : memref<256x128xbf16, #tpu.memory_space<vmem>>, vector<256x128xbf16>
    %c0_4 = arith.constant 0 : index
    %c0_5 = arith.constant 0 : index
    %5 = vector.load %arg3[%c0_4, %c0_5] : memref<128x128xbf16, #tpu.memory_space<vmem>>, vector<128x128xbf16>
    %cst = arith.constant dense<0.000000e+00> : vector<256x128xf32>
    %6 = tpu.matmul %4, %5, %cst {dimension_numbers = #tpu.dot_dimension_numbers<[1], [0], [0], [1], [0, 0, 1, 1], [], []>} : vector<256x128xbf16>, vector<128x128xbf16>, vector<256x128xf32> -> vector<256x128xf32>
    %7 = arith.addf %3, %6 : vector<256x128xf32>
    %c0_6 = arith.constant 0 : index
    %c0_7 = arith.constant 0 : index
    %8 = vector.load %arg6[%c0_6, %c0_7] : memref<256x128xf32, #tpu.memory_space<vmem>>, vector<256x128xf32>
    tpu.vector_store %arg6[%c0_6, %c0_7], %7 {strides = array<i32>} : memref<256x128xf32, #tpu.memory_space<vmem>>, vector<256x128xf32>,
    %c0_i32_8 = arith.constant 0 : i32
    %9 = arith.cmpi eq, %arg1, %c0_i32_8 : i32
    %10 = arith.extui %9 : i1 to i32
    %c0_i32_9 = arith.constant 0 : i32
    %11 = arith.cmpi ne, %10, %c0_i32_9 : i32
    scf.if %11 {
      %c0_10 = arith.constant 0 : index
      %c0_11 = arith.constant 0 : index
      %12 = vector.load %arg6[%c0_10, %c0_11] : memref<256x128xf32, #tpu.memory_space<vmem>>, vector<256x128xf32>
      %c0_12 = arith.constant 0 : index
      %c0_13 = arith.constant 0 : index
      %13 = vector.load %arg4[%c0_12, %c0_13] : memref<1x128xf32, #tpu.memory_space<vmem>>, vector<1x128xf32>
      %14 = vector.broadcast %13 : vector<1x128xf32> to vector<256x128xf32>
      %15 = arith.addf %12, %14 : vector<256x128xf32>
      %cst_14 = arith.constant 0.000000e+00 : f32
      %16 = vector.broadcast %cst_14 : f32 to vector<256x128xf32>
      %17 = arith.maximumf %15, %16 : vector<256x128xf32>
      %c0_15 = arith.constant 0 : index
      %c0_16 = arith.constant 0 : index
      %18 = vector.load %arg5[%c0_15, %c0_16] : memref<256x128xf32, #tpu.memory_space<vmem>>, vector<256x128xf32>
      tpu.vector_store %arg5[%c0_15, %c0_16], %17 {strides = array<i32>} : memref<256x128xf32, #tpu.memory_space<vmem>>, vector<256x128xf32>,
    } else {
    }
    return
  }
  func.func @transform_0(%arg0: i32, %arg1: i32) -> (i32, i32) {
    %c0_i32 = arith.constant 0 : i32
    return %arg0, %arg1 : i32, i32
  }
  func.func @transform_1(%arg0: i32, %arg1: i32) -> (i32, i32) {
    %c0_i32 = arith.constant 0 : i32
    %c0_i32_0 = arith.constant 0 : i32
    return %arg1, %c0_i32 : i32, i32
  }
  func.func @transform_2(%arg0: i32, %arg1: i32) -> (i32, i32) {
    %c0_i32 = arith.constant 0 : i32
    %c0_i32_0 = arith.constant 0 : i32
    %c0_i32_1 = arith.constant 0 : i32
    return %c0_i32, %c0_i32_0 : i32, i32
  }
  func.func @transform_3(%arg0: i32, %arg1: i32) -> (i32, i32) {
    %c0_i32 = arith.constant 0 : i32
    %c0_i32_0 = arith.constant 0 : i32
    return %arg0, %c0_i32 : i32, i32
  }
}

</mosaic_0001>

<bundles_post_ra>
// kernel: basic_block_forward.2
= control target key start
LH: loop header
LB: loop body
LE: loop exit
PB: predicated region body
PF: predicated region fallthrough
CT: control target
= control target key end

     0   :  { %s1398_s12 = smov 0   ;;  %s1400_s13 = smov 0   ;;  %s1535_s0 = inlined_call_operand.vmem [shape: bf16[512,128], index: 0, kind: input, shape index: {}]   ;;  %s1536_s1 = inlined_call_operand.vmem [shape: bf16[128,128], index: 1, kind: input, shape index: {}]   ;;  %s1537_s2 = inlined_call_operand.vmem [shape: f32[1,128], index: 2, kind: input, shape index: {}]   ;;  %s1538_s3 = inlined_call_operand.vmem [shape: bf16[512,128], index: 3, kind: output, shape index: {}]  }
   0x1   :  { %s1402_s14 = smov 0  }
   0x2 LB: > { %s25_s15 = sadd.s32 1, %s1372_s13  ;;  %p1027_p0 = scmp.ge.s32.totalorder %s1376_s14, 1  ;;  %s1376_s14 = sphi %s1402_s14, %s13_s14   ;;  %s1372_s13 = sphi %s1400_s13, %s1540_s13   ;;  %s1368_s12 = sphi %s1398_s12, %s1539_s12  }
   0x3   : > { %p27_p1 = scmp.ge.s32.totalorder %s25_s15, 2  ;;  %p166_p2 = scmp.lt.s32.totalorder %s1376_s14, 3 }
   0x5   : > { %s1542_s15 = smov (%p27_p1, %s25_s15), 0  ;;  %p167_p3 = pnand %p1027_p0, %p166_p2 }
   0x6   : > { %v1330_v0 = vld [vmem:[%s1536_s1] sm:$0xff] (!%p167_p3)   ;;  %s1028_s18 = sshll.u32 (!%p167_p3), %s1368_s12, 5  ;;  %v1331_v1 = vld [vmem:[%s1536_s1 + $0x8] sm:$0xff] (!%p167_p3)   ;;  %v1332_v2 = vld [vmem:[%s1536_s1 + $0x10] sm:$0xff] (!%p167_p3)  }
   0x7   : > { %170 = sbr.rel (%p167_p3) target bundleno = 283 (0x11b), region = 32  ;;  %p199_p4 = scmp.lt.s32.totalorder (!%p167_p3), %s1028_s18, 63  ;;  %1242 = vmatprep.subr.bf16.mxu0 (!%p167_p3), %v1330_v0  ;;  %1290 = vmatprep.subr.bf16.mxu1 (!%p167_p3), %v1330_v0  ;;  %v1333_v3 = vld [vmem:[%s1536_s1 + $0x18] sm:$0xff] (!%p167_p3)   ;;  %v1334_v6 = vld [vmem:[%s1536_s1 + $0x20] sm:$0xff] (!%p167_p3)   ;;  %v1335_v7 = vld [vmem:[%s1536_s1 + $0x28] sm:$0xff] (!%p167_p3)  }
   0x8   : > { %1243 = vmatpush3.bf16.msra.mxu0 (!%p167_p3), %v1330_v0  ;;  %1298 = vmatpush3.bf16.msra.mxu1 (!%p167_p3), %v1330_v0  ;;  %v1336_v8 = vld [vmem:[%s1536_s1 + $0x30] sm:$0xff] (!%p167_p3)   ;;  %v1337_v9 = vld [vmem:[%s1536_s1 + $0x38] sm:$0xff] (!%p167_p3)   ;;  %v1469_v25 = vld [vmem:[%s1537_s2] ss:$0 sm:$0xff] (!%p167_p3) }
   0x9   : > { %1244 = vmatprep.subr.bf16.mxu0 (!%p167_p3), %v1331_v1  ;;  %1291 = vmatprep.subr.bf16.mxu1 (!%p167_p3), %v1331_v1 }
   0xc   : > { %1245 = vmatpush3.bf16.msra.mxu0 (!%p167_p3), %v1331_v1  ;;  %1299 = vmatpush3.bf16.msra.mxu1 (!%p167_p3), %v1331_v1 }
   0xd   : > { %1246 = vmatprep.subr.bf16.mxu0 (!%p167_p3), %v1332_v2  ;;  %1292 = vmatprep.subr.bf16.mxu1 (!%p167_p3), %v1332_v2 }
   0xe   : > { %s1544_s18 = smov (!%p199_p4, %s1028_s18), 63 }
   0xf   : > { %s1029_s23 = sshll.u32 %s1544_s18, 2 }
  0x10   : > { %s1433_s26 = scalar_lea.vmem %s1535_s0, %s1029_s23  ;;  %1247 = vmatpush3.bf16.msra.mxu0 %v1332_v2  ;;  %1300 = vmatpush3.bf16.msra.mxu1 %v1332_v2  ;;  %s1482_s17 = scalar_lea.vmem %s1538_s3, %s1029_s23 }
  0x11   : > { %v1338_v4 = vld [vmem:[%s1433_s26] sm:$0xff]   ;;  %1248 = vmatprep.subr.bf16.mxu0 %v1333_v3  ;;  %1293 = vmatprep.subr.bf16.mxu1 %v1333_v3  ;;  %v1340_v10 = vld [vmem:[%s1433_s26 + $0x8] sm:$0xff]   ;;  %v1342_v12 = vld [vmem:[%s1433_s26 + $0x10] sm:$0xff]  }
  0x12   : > { %v1339_v5 = vld [vmem:[%s1433_s26 + $0x40] sm:$0xff]   ;;  %1258 = vmatprep.mubr.bf16.mxu0 %v1338_v4  ;;  %v1341_v11 = vld [vmem:[%s1433_s26 + $0x48] sm:$0xff]   ;;  %v1343_v13 = vld [vmem:[%s1433_s26 + $0x50] sm:$0xff]  }
  0x13   : > { %1274 = vmatprep.mubr.bf16.mxu1 %v1339_v5  ;;  %v1344_v14 = vld [vmem:[%s1433_s26 + $0x18] sm:$0xff]   ;;  %v1346_v16 = vld [vmem:[%s1433_s26 + $0x20] sm:$0xff]   ;;  %v1348_v18 = vld [vmem:[%s1433_s26 + $0x28] sm:$0xff]  }
  0x14   : > { %1249 = vmatpush3.bf16.msra.mxu0 %v1333_v3  ;;  %1301 = vmatpush3.bf16.msra.mxu1 %v1333_v3  ;;  %v1345_v15 = vld [vmem:[%s1433_s26 + $0x58] sm:$0xff]   ;;  %v1347_v17 = vld [vmem:[%s1433_s26 + $0x60] sm:$0xff]   ;;  %v1349_v19 = vld [vmem:[%s1433_s26 + $0x68] sm:$0xff]  }
  0x15   : > { %1250 = vmatprep.subr.bf16.mxu0 %v1334_v6  ;;  %1294 = vmatprep.subr.bf16.mxu1 %v1334_v6  ;;  %v1350_v20 = vld [vmem:[%s1433_s26 + $0x30] sm:$0xff]   ;;  %v1352_v22 = vld [vmem:[%s1433_s26 + $0x38] sm:$0xff]  }
  0x16   : > { %v1351_v21 = vld [vmem:[%s1433_s26 + $0x70] sm:$0xff]   ;;  %v1353_v23 = vld [vmem:[%s1433_s26 + $0x78] sm:$0xff]  }
  0x18   : > { %1251 = vmatpush3.bf16.msra.mxu0 %v1334_v6  ;;  %1302 = vmatpush3.bf16.msra.mxu1 %v1334_v6 }
  0x19   : > { %1252 = vmatprep.subr.bf16.mxu0 %v1335_v7  ;;  %1295 = vmatprep.subr.bf16.mxu1 %v1335_v7 }
  0x1c   : > { %1253 = vmatpush3.bf16.msra.mxu0 %v1335_v7  ;;  %1303 = vmatpush3.bf16.msra.mxu1 %v1335_v7 }
  0x1d   : > { %1254 = vmatprep.subr.bf16.mxu0 %v1336_v8  ;;  %1296 = vmatprep.subr.bf16.mxu1 %v1336_v8 }
  0x20   : > { %1255 = vmatpush3.bf16.msra.mxu0 %v1336_v8  ;;  %1304 = vmatpush3.bf16.msra.mxu1 %v1336_v8 }
  0x21   : > { %1256 = vmatprep.subr.bf16.mxu0 %v1337_v9  ;;  %1297 = vmatprep.subr.bf16.mxu1 %v1337_v9 }
  0x24   : > { %1257 = vmatpush3.bf16.msra.mxu0 %v1337_v9  ;;  %1305 = vmatpush3.bf16.msra.mxu1 %v1337_v9 }
  0x27   : > { %1259 = vmatmul.mubr.bf16.vlgmr.msra.gmra.mrb[0].mxu0 %v1340_v10  ;;  %1275 = vmatmul.mubr.bf16.vlgmr.msra.gmra.mrb[0].mxu1 %v1341_v11 }
  0x28   : > { %1262 = vmatprep.mubr.bf16.mxu0 %v1342_v12  ;;  %1278 = vmatprep.mubr.bf16.mxu1 %v1343_v13 }
  0x2f   : > { %1263 = vmatmul.mubr.bf16.gmra.mrb[4].mxu0 %v1344_v14  ;;  %1279 = vmatmul.mubr.bf16.gmra.mrb[4].mxu1 %v1345_v15 }
  0x30   : > { %1266 = vmatprep.mubr.bf16.mxu0 %v1346_v16  ;;  %1282 = vmatprep.mubr.bf16.mxu1 %v1347_v17 }
  0x37   : > { %1267 = vmatmul.mubr.bf16.gmra.mrb[8].mxu0 %v1348_v18  ;;  %1283 = vmatmul.mubr.bf16.gmra.mrb[8].mxu1 %v1349_v19 }
  0x38   : > { %1270 = vmatprep.mubr.bf16.mxu0 %v1350_v20  ;;  %1286 = vmatprep.mubr.bf16.mxu1 %v1351_v21 }
  0x3f   : > { %1271 = vmatmul.mubr.bf16.gmra.mrb[12].mxu0 %v1352_v22  ;;  %1287 = vmatmul.mubr.bf16.gmra.mrb[12].mxu1 %v1353_v23 }
  0xfa   : > { %v1260_v24 = vpop.f32.mrb[0].mxu0  ;;  %v1276_v26 = vpop.f32.mrb[0].mxu1 }
  0xfb   : > { %v514_v27 = vpop.f32.mrb[1].mxu0  ;;  %v578_v28 = vpop.f32.mrb[1].mxu1  ;;  %v749_v31 = vadd.f32 %v1260_v24, %v1469_v25  ;;  %v765_v32 = vadd.f32 %v1276_v26, %v1469_v25 }
  0xfc   : > { %v1261_v29 = vpop.f32.mrb[2].mxu0  ;;  %v1277_v30 = vpop.f32.mrb[2].mxu1  ;;  %v747_v37 = vadd.f32 %v1469_v25, %v514_v27  ;;  %v763_v38 = vadd.f32 %v1469_v25, %v578_v28 }
  0xfd   : > { %v750_v33 = vadd.f32 %v1261_v29, %v1469_v25  ;;  %v766_v34 = vadd.f32 %v1277_v30, %v1469_v25  ;;  %v517_v35 = vpop.f32.mrb[3].mxu0  ;;  %v581_v36 = vpop.f32.mrb[3].mxu1 }
  0xfe   : > { %v748_v39 = vadd.f32 %v1469_v25, %v517_v35  ;;  %v764_v40 = vadd.f32 %v1469_v25, %v581_v36 }
  0xff   : > { %v1131_v41 = vpack.c.bf16 %v750_v33, %v749_v31  ;;  %v1171_v42 = vpack.c.bf16 %v766_v34, %v765_v32 }
 0x100   : > { %v1126_v43 = vpack.c.bf16 %v748_v39, %v747_v37  ;;  %v1166_v44 = vpack.c.bf16 %v764_v40, %v763_v38 }
 0x101   : > { %1203 = vst [vmem:[%s1482_s17 + $0x8] sm:$0xff] %v1131_v41   ;;  %1211 = vst [vmem:[%s1482_s17 + $0x48] sm:$0xff] %v1171_v42  }
 0x102   : > { %1127 = vst [vmem:[%s1482_s17] sm:$0xff] %v1126_v43   ;;  %1210 = vst [vmem:[%s1482_s17 + $0x40] sm:$0xff] %v1166_v44   ;;  %v1264_v45 = vpop.f32.mrb[4].mxu0  ;;  %v1280_v46 = vpop.f32.mrb[4].mxu1 }
 0x103   : > { %v530_v47 = vpop.f32.mrb[5].mxu0  ;;  %v594_v48 = vpop.f32.mrb[5].mxu1  ;;  %v753_v51 = vadd.f32 %v1264_v45, %v1469_v25  ;;  %v769_v52 = vadd.f32 %v1280_v46, %v1469_v25 }
 0x104   : > { %v1265_v49 = vpop.f32.mrb[6].mxu0  ;;  %v1281_v50 = vpop.f32.mrb[6].mxu1  ;;  %v751_v57 = vadd.f32 %v1469_v25, %v530_v47  ;;  %v767_v58 = vadd.f32 %v1469_v25, %v594_v48 }
 0x105   : > { %v754_v53 = vadd.f32 %v1265_v49, %v1469_v25  ;;  %v770_v54 = vadd.f32 %v1281_v50, %v1469_v25  ;;  %v533_v55 = vpop.f32.mrb[7].mxu0  ;;  %v597_v56 = vpop.f32.mrb[7].mxu1 }
 0x106   : > { %v752_v59 = vadd.f32 %v1469_v25, %v533_v55  ;;  %v768_v60 = vadd.f32 %v1469_v25, %v597_v56 }
 0x107   : > { %v1141_v61 = vpack.c.bf16 %v754_v53, %v753_v51  ;;  %v1181_v62 = vpack.c.bf16 %v770_v54, %v769_v52 }
 0x108   : > { %v1136_v63 = vpack.c.bf16 %v752_v59, %v751_v57  ;;  %v1176_v0 = vpack.c.bf16 %v768_v60, %v767_v58 }
 0x109   : > { %1205 = vst [vmem:[%s1482_s17 + $0x18] sm:$0xff] %v1141_v61   ;;  %1213 = vst [vmem:[%s1482_s17 + $0x58] sm:$0xff] %v1181_v62  }
 0x10a   : > { %1204 = vst [vmem:[%s1482_s17 + $0x10] sm:$0xff] %v1136_v63   ;;  %1212 = vst [vmem:[%s1482_s17 + $0x50] sm:$0xff] %v1176_v0   ;;  %v1268_v1 = vpop.f32.mrb[8].mxu0  ;;  %v1284_v2 = vpop.f32.mrb[8].mxu1 }
 0x10b   : > { %v546_v3 = vpop.f32.mrb[9].mxu0  ;;  %v610_v4 = vpop.f32.mrb[9].mxu1  ;;  %v757_v7 = vadd.f32 %v1268_v1, %v1469_v25  ;;  %v773_v8 = vadd.f32 %v1284_v2, %v1469_v25 }
 0x10c   : > { %v1269_v5 = vpop.f32.mrb[10].mxu0  ;;  %v1285_v6 = vpop.f32.mrb[10].mxu1  ;;  %v755_v13 = vadd.f32 %v1469_v25, %v546_v3  ;;  %v771_v14 = vadd.f32 %v1469_v25, %v610_v4 }
 0x10d   : > { %v758_v9 = vadd.f32 %v1269_v5, %v1469_v25  ;;  %v774_v10 = vadd.f32 %v1285_v6, %v1469_v25  ;;  %v549_v11 = vpop.f32.mrb[11].mxu0  ;;  %v613_v12 = vpop.f32.mrb[11].mxu1 }
 0x10e   : > { %v756_v15 = vadd.f32 %v1469_v25, %v549_v11  ;;  %v772_v16 = vadd.f32 %v1469_v25, %v613_v12 }
 0x10f   : > { %v1151_v17 = vpack.c.bf16 %v758_v9, %v757_v7  ;;  %v1191_v18 = vpack.c.bf16 %v774_v10, %v773_v8 }
 0x110   : > { %v1146_v19 = vpack.c.bf16 %v756_v15, %v755_v13  ;;  %v1186_v20 = vpack.c.bf16 %v772_v16, %v771_v14 }
 0x111   : > { %1207 = vst [vmem:[%s1482_s17 + $0x28] sm:$0xff] %v1151_v17   ;;  %1215 = vst [vmem:[%s1482_s17 + $0x68] sm:$0xff] %v1191_v18  }
 0x112   : > { %1206 = vst [vmem:[%s1482_s17 + $0x20] sm:$0xff] %v1146_v19   ;;  %1214 = vst [vmem:[%s1482_s17 + $0x60] sm:$0xff] %v1186_v20   ;;  %v1272_v21 = vpop.f32.mrb[12].mxu0  ;;  %v1288_v22 = vpop.f32.mrb[12].mxu1 }
 0x113   : > { %v562_v23 = vpop.f32.mrb[13].mxu0  ;;  %v626_v24 = vpop.f32.mrb[13].mxu1  ;;  %v761_v28 = vadd.f32 %v1272_v21, %v1469_v25  ;;  %v777_v29 = vadd.f32 %v1288_v22, %v1469_v25 }
 0x114   : > { %v1273_v26 = vpop.f32.mrb[14].mxu0  ;;  %v1289_v27 = vpop.f32.mrb[14].mxu1  ;;  %v759_v34 = vadd.f32 %v1469_v25, %v562_v23  ;;  %v775_v35 = vadd.f32 %v1469_v25, %v626_v24 }
 0x115   : > { %v762_v30 = vadd.f32 %v1273_v26, %v1469_v25  ;;  %v778_v31 = vadd.f32 %v1289_v27, %v1469_v25  ;;  %v565_v32 = vpop.f32.mrb[15].mxu0  ;;  %v629_v33 = vpop.f32.mrb[15].mxu1 }
 0x116   : > { %v760_v36 = vadd.f32 %v1469_v25, %v565_v32  ;;  %v776_v37 = vadd.f32 %v1469_v25, %v629_v33 }
 0x117   : > { %v1161_v38 = vpack.c.bf16 %v762_v30, %v761_v28  ;;  %v1201_v39 = vpack.c.bf16 %v778_v31, %v777_v29 }
 0x118   : > { %v1156_v40 = vpack.c.bf16 %v760_v36, %v759_v34  ;;  %v1196_v41 = vpack.c.bf16 %v776_v37, %v775_v35 }
 0x119   : > { %1209 = vst [vmem:[%s1482_s17 + $0x38] sm:$0xff] %v1161_v38   ;;  %1217 = vst [vmem:[%s1482_s17 + $0x78] sm:$0xff] %v1201_v39  }
 0x11a   : > { %1208 = vst [vmem:[%s1482_s17 + $0x30] sm:$0xff] %v1156_v40   ;;  %1216 = vst [vmem:[%s1482_s17 + $0x70] sm:$0xff] %v1196_v41  }
 0x11b PF: > { %s13_s14 = sadd.s32 1, %s1376_s14   ;;  %s1539_s12 = smov %s1372_s13 }
 0x11c   : > { %p10_p5 = scmp.ge.s32.totalorder %s13_s14, 4   ;;  %s1540_s13 = smov %s1542_s15 }
 0x11e   :  { %12 = sbr.rel (!%p10_p5) target bundleno = 2 (0x2), region = 73 }

// kernel: basic_block_forward.3
= control target key start
LH: loop header
LB: loop body
LE: loop exit
PB: predicated region body
PF: predicated region fallthrough
CT: control target
= control target key end

     0   :  { %s1143_s12 = smov 0   ;;  %s1145_s13 = smov 0   ;;  %s1293_s0 = inlined_call_operand.vmem [shape: bf16[512,128], index: 0, kind: input, shape index: {}]   ;;  %s1294_s1 = inlined_call_operand.vmem [shape: bf16[128,128], index: 1, kind: input, shape index: {}]   ;;  %s1295_s2 = inlined_call_operand.vmem [shape: f32[1,128], index: 2, kind: input, shape index: {}]   ;;  %s1296_s3 = inlined_call_operand.vmem [shape: f32[512,128], index: 3, kind: output, shape index: {}]  }
   0x1   :  { %s1147_s14 = smov 0  }
   0x2 LB: > { %s25_s15 = sadd.s32 1, %s1117_s13  ;;  %p931_p0 = scmp.ge.s32.totalorder %s1121_s14, 1  ;;  %s1121_s14 = sphi %s1147_s14, %s13_s14   ;;  %s1117_s13 = sphi %s1145_s13, %s1298_s13   ;;  %s1113_s12 = sphi %s1143_s12, %s1297_s12  }
   0x3   : > { %p27_p1 = scmp.ge.s32.totalorder %s25_s15, 2  ;;  %p166_p2 = scmp.lt.s32.totalorder %s1121_s14, 3 }
   0x5   : > { %s1300_s15 = smov (%p27_p1, %s25_s15), 0  ;;  %p167_p3 = pnand %p931_p0, %p166_p2 }
   0x6   : > { %v1075_v0 = vld [vmem:[%s1294_s1] sm:$0xff] (!%p167_p3)   ;;  %s932_s18 = sshll.u32 (!%p167_p3), %s1113_s12, 5  ;;  %v1076_v1 = vld [vmem:[%s1294_s1 + $0x8] sm:$0xff] (!%p167_p3)   ;;  %v1077_v2 = vld [vmem:[%s1294_s1 + $0x10] sm:$0xff] (!%p167_p3)  }
   0x7   : > { %170 = sbr.rel (%p167_p3) target bundleno = 283 (0x11b), region = 32  ;;  %p199_p4 = scmp.lt.s32.totalorder (!%p167_p3), %s932_s18, 63  ;;  %987 = vmatprep.subr.bf16.mxu0 (!%p167_p3), %v1075_v0  ;;  %1035 = vmatprep.subr.bf16.mxu1 (!%p167_p3), %v1075_v0  ;;  %v1078_v3 = vld [vmem:[%s1294_s1 + $0x18] sm:$0xff] (!%p167_p3)   ;;  %v1079_v6 = vld [vmem:[%s1294_s1 + $0x20] sm:$0xff] (!%p167_p3)   ;;  %v1080_v7 = vld [vmem:[%s1294_s1 + $0x28] sm:$0xff] (!%p167_p3)  }
   0x8   : > { %988 = vmatpush3.bf16.msra.mxu0 (!%p167_p3), %v1075_v0  ;;  %1043 = vmatpush3.bf16.msra.mxu1 (!%p167_p3), %v1075_v0  ;;  %v1081_v8 = vld [vmem:[%s1294_s1 + $0x30] sm:$0xff] (!%p167_p3)   ;;  %v1082_v9 = vld [vmem:[%s1294_s1 + $0x38] sm:$0xff] (!%p167_p3)   ;;  %v1212_v24 = vld [vmem:[%s1295_s2] ss:$0 sm:$0xff] (!%p167_p3) }
   0x9   : > { %989 = vmatprep.subr.bf16.mxu0 (!%p167_p3), %v1076_v1  ;;  %1036 = vmatprep.subr.bf16.mxu1 (!%p167_p3), %v1076_v1 }
   0xc   : > { %990 = vmatpush3.bf16.msra.mxu0 (!%p167_p3), %v1076_v1  ;;  %1044 = vmatpush3.bf16.msra.mxu1 (!%p167_p3), %v1076_v1 }
   0xd   : > { %991 = vmatprep.subr.bf16.mxu0 (!%p167_p3), %v1077_v2  ;;  %1037 = vmatprep.subr.bf16.mxu1 (!%p167_p3), %v1077_v2 }
   0xe   : > { %s1302_s18 = smov (!%p199_p4, %s932_s18), 63 }
   0xf   : > { %s933_s23 = sshll.u32 %s1302_s18, 2  ;;  %s935_s12 = sshll.u32 %s1302_s18, 3 }
  0x10   : > { %s1176_s26 = scalar_lea.vmem %s1293_s0, %s933_s23  ;;  %992 = vmatpush3.bf16.msra.mxu0 %v1077_v2  ;;  %1045 = vmatpush3.bf16.msra.mxu1 %v1077_v2  ;;  %s1220_s19 = scalar_lea.vmem %s1296_s3, %s935_s12 }
  0x11   : > { %v1083_v4 = vld [vmem:[%s1176_s26] sm:$0xff]   ;;  %993 = vmatprep.subr.bf16.mxu0 %v1078_v3  ;;  %1038 = vmatprep.subr.bf16.mxu1 %v1078_v3  ;;  %v1085_v10 = vld [vmem:[%s1176_s26 + $0x8] sm:$0xff]   ;;  %v1087_v12 = vld [vmem:[%s1176_s26 + $0x10] sm:$0xff]  }
  0x12   : > { %v1084_v5 = vld [vmem:[%s1176_s26 + $0x40] sm:$0xff]   ;;  %1003 = vmatprep.mubr.bf16.mxu0 %v1083_v4  ;;  %v1086_v11 = vld [vmem:[%s1176_s26 + $0x48] sm:$0xff]   ;;  %v1088_v13 = vld [vmem:[%s1176_s26 + $0x50] sm:$0xff]  }
  0x13   : > { %1019 = vmatprep.mubr.bf16.mxu1 %v1084_v5  ;;  %v1089_v14 = vld [vmem:[%s1176_s26 + $0x18] sm:$0xff]   ;;  %v1091_v16 = vld [vmem:[%s1176_s26 + $0x20] sm:$0xff]   ;;  %v1093_v18 = vld [vmem:[%s1176_s26 + $0x28] sm:$0xff]  }
  0x14   : > { %994 = vmatpush3.bf16.msra.mxu0 %v1078_v3  ;;  %1046 = vmatpush3.bf16.msra.mxu1 %v1078_v3  ;;  %v1090_v15 = vld [vmem:[%s1176_s26 + $0x58] sm:$0xff]   ;;  %v1092_v17 = vld [vmem:[%s1176_s26 + $0x60] sm:$0xff]   ;;  %v1094_v19 = vld [vmem:[%s1176_s26 + $0x68] sm:$0xff]  }
  0x15   : > { %995 = vmatprep.subr.bf16.mxu0 %v1079_v6  ;;  %1039 = vmatprep.subr.bf16.mxu1 %v1079_v6  ;;  %v1095_v20 = vld [vmem:[%s1176_s26 + $0x30] sm:$0xff]   ;;  %v1097_v22 = vld [vmem:[%s1176_s26 + $0x38] sm:$0xff]  }
  0x16   : > { %v1096_v21 = vld [vmem:[%s1176_s26 + $0x70] sm:$0xff]   ;;  %v1098_v23 = vld [vmem:[%s1176_s26 + $0x78] sm:$0xff]  }
  0x18   : > { %996 = vmatpush3.bf16.msra.mxu0 %v1079_v6  ;;  %1047 = vmatpush3.bf16.msra.mxu1 %v1079_v6 }
  0x19   : > { %997 = vmatprep.subr.bf16.mxu0 %v1080_v7  ;;  %1040 = vmatprep.subr.bf16.mxu1 %v1080_v7 }
  0x1c   : > { %998 = vmatpush3.bf16.msra.mxu0 %v1080_v7  ;;  %1048 = vmatpush3.bf16.msra.mxu1 %v1080_v7 }
  0x1d   : > { %999 = vmatprep.subr.bf16.mxu0 %v1081_v8  ;;  %1041 = vmatprep.subr.bf16.mxu1 %v1081_v8 }
  0x20   : > { %1000 = vmatpush3.bf16.msra.mxu0 %v1081_v8  ;;  %1049 = vmatpush3.bf16.msra.mxu1 %v1081_v8 }
  0x21   : > { %1001 = vmatprep.subr.bf16.mxu0 %v1082_v9  ;;  %1042 = vmatprep.subr.bf16.mxu1 %v1082_v9 }
  0x24   : > { %1002 = vmatpush3.bf16.msra.mxu0 %v1082_v9  ;;  %1050 = vmatpush3.bf16.msra.mxu1 %v1082_v9 }
  0x27   : > { %1004 = vmatmul.mubr.bf16.vlgmr.msra.gmra.mrb[0].mxu0 %v1085_v10  ;;  %1020 = vmatmul.mubr.bf16.vlgmr.msra.gmra.mrb[0].mxu1 %v1086_v11 }
  0x28   : > { %1007 = vmatprep.mubr.bf16.mxu0 %v1087_v12  ;;  %1023 = vmatprep.mubr.bf16.mxu1 %v1088_v13 }
  0x2f   : > { %1008 = vmatmul.mubr.bf16.gmra.mrb[4].mxu0 %v1089_v14  ;;  %1024 = vmatmul.mubr.bf16.gmra.mrb[4].mxu1 %v1090_v15 }
  0x30   : > { %1011 = vmatprep.mubr.bf16.mxu0 %v1091_v16  ;;  %1027 = vmatprep.mubr.bf16.mxu1 %v1092_v17 }
  0x37   : > { %1012 = vmatmul.mubr.bf16.gmra.mrb[8].mxu0 %v1093_v18  ;;  %1028 = vmatmul.mubr.bf16.gmra.mrb[8].mxu1 %v1094_v19 }
  0x38   : > { %1015 = vmatprep.mubr.bf16.mxu0 %v1095_v20  ;;  %1031 = vmatprep.mubr.bf16.mxu1 %v1096_v21 }
  0x3f   : > { %1016 = vmatmul.mubr.bf16.gmra.mrb[12].mxu0 %v1097_v22  ;;  %1032 = vmatmul.mubr.bf16.gmra.mrb[12].mxu1 %v1098_v23 }
  0xfa   : > { %v1005_v25 = vpop.f32.mrb[0].mxu0  ;;  %v1021_v26 = vpop.f32.mrb[0].mxu1 }
  0xfb   : > { %v749_v27 = vadd.f32 %v1005_v25, %v1212_v24  ;;  %v765_v28 = vadd.f32 %v1021_v26, %v1212_v24  ;;  %v514_v29 = vpop.f32.mrb[1].mxu0  ;;  %v578_v30 = vpop.f32.mrb[1].mxu1 }
  0xfc   : > { %v747_v31 = vadd.f32 %v1212_v24, %v514_v29  ;;  %v763_v32 = vadd.f32 %v1212_v24, %v578_v30  ;;  %v1006_v33 = vpop.f32.mrb[2].mxu0  ;;  %v1022_v34 = vpop.f32.mrb[2].mxu1 }
  0xfd   : > { %v781_v35 = vmax.f32 %v749_v27, 0.0  ;;  %v797_v36 = vmax.f32 %v765_v28, 0.0  ;;  %v750_v37 = vadd.f32 %v1006_v33, %v1212_v24  ;;  %v766_v38 = vadd.f32 %v1022_v34, %v1212_v24  ;;  %v517_v39 = vpop.f32.mrb[3].mxu0  ;;  %v581_v40 = vpop.f32.mrb[3].mxu1 }
  0xfe   : > { %v779_v41 = vmax.f32 %v747_v31, 0.0  ;;  %v795_v42 = vmax.f32 %v763_v32, 0.0  ;;  %v748_v43 = vadd.f32 %v1212_v24, %v517_v39  ;;  %v764_v44 = vadd.f32 %v1212_v24, %v581_v40 }
  0xff   : > { %813 = vst [vmem:[%s1220_s19 + $0x10] sm:$0xff] %v781_v35  ;;  %829 = vst [vmem:[%s1220_s19 + $0x90] sm:$0xff] %v797_v36  ;;  %v782_v45 = vmax.f32 %v750_v37, 0.0  ;;  %v798_v46 = vmax.f32 %v766_v38, 0.0 }
 0x100   : > { %811 = vst [vmem:[%s1220_s19] sm:$0xff] %v779_v41  ;;  %827 = vst [vmem:[%s1220_s19 + $0x80] sm:$0xff] %v795_v42  ;;  %v780_v47 = vmax.f32 %v748_v43, 0.0  ;;  %v796_v48 = vmax.f32 %v764_v44, 0.0 }
 0x101   : > { %814 = vst [vmem:[%s1220_s19 + $0x18] sm:$0xff] %v782_v45  ;;  %830 = vst [vmem:[%s1220_s19 + $0x98] sm:$0xff] %v798_v46 }
 0x102   : > { %812 = vst [vmem:[%s1220_s19 + $0x8] sm:$0xff] %v780_v47  ;;  %828 = vst [vmem:[%s1220_s19 + $0x88] sm:$0xff] %v796_v48  ;;  %v1009_v49 = vpop.f32.mrb[4].mxu0  ;;  %v1025_v50 = vpop.f32.mrb[4].mxu1 }
 0x103   : > { %v753_v51 = vadd.f32 %v1009_v49, %v1212_v24  ;;  %v769_v52 = vadd.f32 %v1025_v50, %v1212_v24  ;;  %v530_v53 = vpop.f32.mrb[5].mxu0  ;;  %v594_v54 = vpop.f32.mrb[5].mxu1 }
 0x104   : > { %v751_v55 = vadd.f32 %v1212_v24, %v530_v53  ;;  %v767_v56 = vadd.f32 %v1212_v24, %v594_v54  ;;  %v1010_v57 = vpop.f32.mrb[6].mxu0  ;;  %v1026_v58 = vpop.f32.mrb[6].mxu1 }
 0x105   : > { %v785_v59 = vmax.f32 %v753_v51, 0.0  ;;  %v801_v60 = vmax.f32 %v769_v52, 0.0  ;;  %v754_v61 = vadd.f32 %v1010_v57, %v1212_v24  ;;  %v770_v62 = vadd.f32 %v1026_v58, %v1212_v24  ;;  %v533_v63 = vpop.f32.mrb[7].mxu0  ;;  %v597_v0 = vpop.f32.mrb[7].mxu1 }
 0x106   : > { %v783_v1 = vmax.f32 %v751_v55, 0.0  ;;  %v799_v2 = vmax.f32 %v767_v56, 0.0  ;;  %v752_v3 = vadd.f32 %v1212_v24, %v533_v63  ;;  %v768_v4 = vadd.f32 %v1212_v24, %v597_v0 }
 0x107   : > { %817 = vst [vmem:[%s1220_s19 + $0x30] sm:$0xff] %v785_v59  ;;  %833 = vst [vmem:[%s1220_s19 + $0xb0] sm:$0xff] %v801_v60  ;;  %v786_v5 = vmax.f32 %v754_v61, 0.0  ;;  %v802_v6 = vmax.f32 %v770_v62, 0.0 }
 0x108   : > { %815 = vst [vmem:[%s1220_s19 + $0x20] sm:$0xff] %v783_v1  ;;  %831 = vst [vmem:[%s1220_s19 + $0xa0] sm:$0xff] %v799_v2  ;;  %v784_v7 = vmax.f32 %v752_v3, 0.0  ;;  %v800_v8 = vmax.f32 %v768_v4, 0.0 }
 0x109   : > { %818 = vst [vmem:[%s1220_s19 + $0x38] sm:$0xff] %v786_v5  ;;  %834 = vst [vmem:[%s1220_s19 + $0xb8] sm:$0xff] %v802_v6 }
 0x10a   : > { %816 = vst [vmem:[%s1220_s19 + $0x28] sm:$0xff] %v784_v7  ;;  %832 = vst [vmem:[%s1220_s19 + $0xa8] sm:$0xff] %v800_v8  ;;  %v1013_v9 = vpop.f32.mrb[8].mxu0  ;;  %v1029_v10 = vpop.f32.mrb[8].mxu1 }
 0x10b   : > { %v757_v11 = vadd.f32 %v1013_v9, %v1212_v24  ;;  %v773_v12 = vadd.f32 %v1029_v10, %v1212_v24  ;;  %v546_v13 = vpop.f32.mrb[9].mxu0  ;;  %v610_v14 = vpop.f32.mrb[9].mxu1 }
 0x10c   : > { %v755_v15 = vadd.f32 %v1212_v24, %v546_v13  ;;  %v771_v16 = vadd.f32 %v1212_v24, %v610_v14  ;;  %v1014_v17 = vpop.f32.mrb[10].mxu0  ;;  %v1030_v18 = vpop.f32.mrb[10].mxu1 }
 0x10d   : > { %v789_v19 = vmax.f32 %v757_v11, 0.0  ;;  %v805_v20 = vmax.f32 %v773_v12, 0.0  ;;  %v758_v21 = vadd.f32 %v1014_v17, %v1212_v24  ;;  %v774_v22 = vadd.f32 %v1030_v18, %v1212_v24  ;;  %v549_v23 = vpop.f32.mrb[11].mxu0  ;;  %v613_v25 = vpop.f32.mrb[11].mxu1 }
 0x10e   : > { %v787_v26 = vmax.f32 %v755_v15, 0.0  ;;  %v803_v27 = vmax.f32 %v771_v16, 0.0  ;;  %v756_v28 = vadd.f32 %v1212_v24, %v549_v23  ;;  %v772_v29 = vadd.f32 %v1212_v24, %v613_v25 }
 0x10f   : > { %821 = vst [vmem:[%s1220_s19 + $0x50] sm:$0xff] %v789_v19  ;;  %837 = vst [vmem:[%s1220_s19 + $0xd0] sm:$0xff] %v805_v20  ;;  %v790_v30 = vmax.f32 %v758_v21, 0.0  ;;  %v806_v31 = vmax.f32 %v774_v22, 0.0 }
 0x110   : > { %819 = vst [vmem:[%s1220_s19 + $0x40] sm:$0xff] %v787_v26  ;;  %835 = vst [vmem:[%s1220_s19 + $0xc0] sm:$0xff] %v803_v27  ;;  %v788_v32 = vmax.f32 %v756_v28, 0.0  ;;  %v804_v33 = vmax.f32 %v772_v29, 0.0 }
 0x111   : > { %822 = vst [vmem:[%s1220_s19 + $0x58] sm:$0xff] %v790_v30  ;;  %838 = vst [vmem:[%s1220_s19 + $0xd8] sm:$0xff] %v806_v31 }
 0x112   : > { %820 = vst [vmem:[%s1220_s19 + $0x48] sm:$0xff] %v788_v32  ;;  %836 = vst [vmem:[%s1220_s19 + $0xc8] sm:$0xff] %v804_v33  ;;  %v1017_v34 = vpop.f32.mrb[12].mxu0  ;;  %v1033_v35 = vpop.f32.mrb[12].mxu1 }
 0x113   : > { %v761_v36 = vadd.f32 %v1017_v34, %v1212_v24  ;;  %v777_v37 = vadd.f32 %v1033_v35, %v1212_v24  ;;  %v562_v38 = vpop.f32.mrb[13].mxu0  ;;  %v626_v39 = vpop.f32.mrb[13].mxu1 }
 0x114   : > { %v759_v40 = vadd.f32 %v1212_v24, %v562_v38  ;;  %v775_v41 = vadd.f32 %v1212_v24, %v626_v39  ;;  %v1018_v42 = vpop.f32.mrb[14].mxu0  ;;  %v1034_v43 = vpop.f32.mrb[14].mxu1 }
 0x115   : > { %v793_v44 = vmax.f32 %v761_v36, 0.0  ;;  %v809_v45 = vmax.f32 %v777_v37, 0.0  ;;  %v762_v46 = vadd.f32 %v1018_v42, %v1212_v24  ;;  %v778_v47 = vadd.f32 %v1034_v43, %v1212_v24  ;;  %v565_v48 = vpop.f32.mrb[15].mxu0  ;;  %v629_v49 = vpop.f32.mrb[15].mxu1 }
 0x116   : > { %v791_v50 = vmax.f32 %v759_v40, 0.0  ;;  %v807_v51 = vmax.f32 %v775_v41, 0.0  ;;  %v760_v52 = vadd.f32 %v1212_v24, %v565_v48  ;;  %v776_v53 = vadd.f32 %v1212_v24, %v629_v49 }
 0x117   : > { %825 = vst [vmem:[%s1220_s19 + $0x70] sm:$0xff] %v793_v44  ;;  %841 = vst [vmem:[%s1220_s19 + $0xf0] sm:$0xff] %v809_v45  ;;  %v794_v54 = vmax.f32 %v762_v46, 0.0  ;;  %v810_v55 = vmax.f32 %v778_v47, 0.0 }
 0x118   : > { %823 = vst [vmem:[%s1220_s19 + $0x60] sm:$0xff] %v791_v50  ;;  %839 = vst [vmem:[%s1220_s19 + $0xe0] sm:$0xff] %v807_v51  ;;  %v792_v56 = vmax.f32 %v760_v52, 0.0  ;;  %v808_v57 = vmax.f32 %v776_v53, 0.0 }
 0x119   : > { %826 = vst [vmem:[%s1220_s19 + $0x78] sm:$0xff] %v794_v54  ;;  %842 = vst [vmem:[%s1220_s19 + $0xf8] sm:$0xff] %v810_v55 }
 0x11a   : > { %824 = vst [vmem:[%s1220_s19 + $0x68] sm:$0xff] %v792_v56  ;;  %840 = vst [vmem:[%s1220_s19 + $0xe8] sm:$0xff] %v808_v57 }
 0x11b PF: > { %s13_s14 = sadd.s32 1, %s1121_s14   ;;  %s1297_s12 = smov %s1117_s13 }
 0x11c   : > { %p10_p5 = scmp.ge.s32.totalorder %s13_s14, 4   ;;  %s1298_s13 = smov %s1300_s15 }
 0x11e   :  { %12 = sbr.rel (!%p10_p5) target bundleno = 2 (0x2), region = 73 }

</bundles_post_ra>
